<compile_context>
chip_gen: v7x
topology: tpu7x:2x2x1
jax: 0.10.0
libtpu: 0.0.40
codegen_flags: <defaults>
</compile_context>

<pallas_src>
import jax
import jax.numpy as jnp
import numpy as np
from jax.experimental import pallas as pl
from jax.experimental.pallas import tpu as pltpu

EPS = 1e-5
LANE = 128


def _round_up(x, m):
    return (x + m - 1) // m * m


def _pick_tile(m, candidates=(1024, 512, 256, 128, 64, 32, 16, 8)):
    for c in candidates:
        if m % c == 0:
            return c
    return m


def _pad_last(a, to):
    return jnp.pad(a, [(0, 0)] * (a.ndim - 1) + [(0, to - a.shape[-1])])


# ------------------------------ Pallas kernels ------------------------------

def bn_stats_kernel(x_ref, s_ref):
    """Accumulate per-channel [sum; sum_of_squares] over a tiled row grid."""
    @pl.when(pl.program_id(0) == 0)
    def _():
        s_ref[...] = jnp.zeros_like(s_ref)

    x = x_ref[...]
    s_ref[...] += jnp.concatenate(
        [jnp.sum(x, axis=0, keepdims=True),
         jnp.sum(x * x, axis=0, keepdims=True)], axis=0)


def bn1_conv1_kernel(xph_ref, scale1_ref, shift1_ref, w1_ref,
                     c1_ref, s2_ref, hp_ref):
    """Per image: BN1-normalize + ReLU6, conv1 (3x3, stride 2, pad 1) as nine
    shifted-window matmuls on the stride-2 phase decomposition, plus partial
    BN2 statistics of the conv1 output."""
    _, _, hh, wh, cp = xph_ref.shape
    coutp = w1_ref.shape[-1]

    s = scale1_ref[...].reshape(1, 1, 1, cp)
    t = shift1_ref[...].reshape(1, 1, 1, cp)
    h = jnp.clip(xph_ref[0] * s + t, 0.0, 6.0)            # (4, hh, wh, cp)

    # One zero row at the top / one zero column at the left of every phase
    # (this realizes the conv's zero padding *after* BN+ReLU6, as required).
    hp_ref[...] = jnp.zeros_like(hp_ref)
    hp_ref[:, 1:, 1:, :] = h

    # kernel tap -> (phase, offset inside the padded phase image):
    #   k=0 -> odd phase, off 0 ; k=1 -> even phase, off 1 ; k=2 -> odd phase, off 1
    tap = ((1, 0), (0, 1), (1, 1))

    acc = jnp.zeros((hh * wh, coutp), jnp.float32)
    for kh in range(3):
        p, rh = tap[kh]
        for kw in range(3):
            q, rw = tap[kw]
            win = hp_ref[2 * p + q, rh:rh + hh, rw:rw + wh, :]
            acc = acc + jnp.dot(win.reshape(hh * wh, cp),
                                w1_ref[3 * kh + kw],
                                preferred_element_type=jnp.float32)
    # conv1 bias intentionally omitted: exactly cancelled by BN2's mean subtraction.

    c1_ref[0] = acc.reshape(hh, wh, coutp)
    s2_ref[0] = jnp.concatenate(
        [jnp.sum(acc, axis=0, keepdims=True),
         jnp.sum(acc * acc, axis=0, keepdims=True)], axis=0)


def bn2_conv2_residual_kernel(c1_ref, xph_ref, scale2_ref, shift2_ref,
                              w2_ref, b2_ref, wres_ref, bres_ref,
                              out_ref, gp_ref):
    """Per image: BN2-normalize + ReLU6, conv2 (3x3, stride 1, pad 1) as nine
    shifted-window matmuls, 1x1/stride-2 residual conv fed directly from phase
    (0,0) of x, and the final add."""
    _, ho, wo, coutp = c1_ref.shape
    cp = xph_ref.shape[-1]

    s = scale2_ref[...].reshape(1, 1, coutp)
    t = shift2_ref[...].reshape(1, 1, coutp)
    g = jnp.clip(c1_ref[0] * s + t, 0.0, 6.0)             # (ho, wo, coutp)

    gp_ref[...] = jnp.zeros_like(gp_ref)
    gp_ref[1:ho + 1, 1:wo + 1, :] = g

    acc = jnp.zeros((ho * wo, coutp), jnp.float32)
    for kh in range(3):
        for kw in range(3):
            win = gp_ref[kh:kh + ho, kw:kw + wo, :]
            acc = acc + jnp.dot(win.reshape(ho * wo, coutp),
                                w2_ref[3 * kh + kw],
                                preferred_element_type=jnp.float32)
    acc = acc + b2_ref[...]

    xs = xph_ref[0, 0].reshape(ho * wo, cp)               # == x[:, ::2, ::2, :]
    acc = acc + jnp.dot(xs, wres_ref[...],
                        preferred_element_type=jnp.float32) + bres_ref[...]

    out_ref[0] = acc.reshape(ho, wo, coutp)


# ------------------------------ forward wrapper ------------------------------

def downsampling_block_forward(x_nchw, params):
    x = jnp.transpose(x_nchw, (0, 2, 3, 1)).astype(jnp.float32)   # NCHW -> NHWC
    n, h, w, cin = x.shape
    cout = params["w_res"].shape[1]
    assert h % 2 == 0 and w % 2 == 0, "spatial dims must be even"
    hh, wh = h // 2, w // 2
    cp, coutp = _round_up(cin, LANE), _round_up(cout, LANE)

    # Stride-2 phase split + lane-dense channel padding.  Phase order (p,q):
    # (0,0),(0,1),(1,0),(1,1)  -> axis-1 index = 2*p + q.
    xph = jnp.stack([x[:, p::2, q::2, :] for p in (0, 1) for q in (0, 1)],
                    axis=1)                                       # (n,4,hh,wh,cin)
    xph = _pad_last(xph, cp)                                      # (n,4,hh,wh,cp)

    # -------- BN1 batch statistics (tiled cross-tile reduction) --------
    m1 = n * h * w
    tile_m = _pick_tile(m1)
    stats1 = pl.pallas_call(
        bn_stats_kernel,
        out_shape=jax.ShapeDtypeStruct((2, cp), jnp.float32),
        grid=(m1 // tile_m,),
        in_specs=[pl.BlockSpec((tile_m, cp), lambda i: (i, 0))],
        out_specs=pl.BlockSpec((2, cp), lambda i: (0, 0)),
        compiler_params=pltpu.CompilerParams(dimension_semantics=("arbitrary",)),
    )(xph.reshape(m1, cp))
    mean1 = stats1[0] / m1
    var1 = stats1[1] / m1 - mean1 * mean1                 # biased batch variance
    scale1 = _pad_last(params["gamma1"], cp) * jax.lax.rsqrt(var1[None, :] + EPS)
    shift1 = _pad_last(params["beta1"], cp) - mean1[None, :] * scale1

    # -------- stage 1: BN1 + ReLU6 + conv1(3x3,s2) + partial BN2 stats --------
    w1p = jnp.pad(params["w1"],
                  ((0, 0), (0, 0), (0, cp - cin), (0, coutp - cout))
                  ).reshape(9, cp, coutp)
    c1, s2 = pl.pallas_call(
        bn1_conv1_kernel,
        out_shape=(jax.ShapeDtypeStruct((n, hh, wh, coutp), jnp.float32),
                   jax.ShapeDtypeStruct((n, 2, coutp), jnp.float32)),
        grid=(n,),
        in_specs=[pl.BlockSpec((1, 4, hh, wh, cp), lambda b: (b, 0, 0, 0, 0)),
                  pl.BlockSpec((1, cp), lambda b: (0, 0)),
                  pl.BlockSpec((1, cp), lambda b: (0, 0)),
                  pl.BlockSpec((9, cp, coutp), lambda b: (0, 0, 0))],
        out_specs=(pl.BlockSpec((1, hh, wh, coutp), lambda b: (b, 0, 0, 0)),
                   pl.BlockSpec((1, 2, coutp), lambda b: (b, 0, 0))),
        scratch_shapes=[pltpu.VMEM((4, hh + 1, wh + 1, cp), jnp.float32)],
        compiler_params=pltpu.CompilerParams(dimension_semantics=("parallel",)),
    )(xph, scale1, shift1, w1p)

    # BN2 batch statistics from the per-image partial sums (tiny (n,2,coutp)).
    m2 = n * hh * wh
    mean2 = jnp.sum(s2[:, 0, :], axis=0) / m2
    var2 = jnp.sum(s2[:, 1, :], axis=0) / m2 - mean2 * mean2
    scale2 = _pad_last(params["gamma2"], coutp) * jax.lax.rsqrt(var2[None, :] + EPS)
    shift2 = _pad_last(params["beta2"], coutp) - mean2[None, :] * scale2

    # -------- stage 2: BN2 + ReLU6 + conv2(3x3,s1) + residual(1x1,s2) + add --------
    w2p = jnp.pad(params["w2"],
                  ((0, 0), (0, 0), (0, coutp - cout), (0, coutp - cout))
                  ).reshape(9, coutp, coutp)
    wres = jnp.pad(params["w_res"], ((0, cp - cin), (0, coutp - cout)))
    b2 = _pad_last(params["b2"], coutp)
    bres = _pad_last(params["b_res"], coutp)

    out = pl.pallas_call(
        bn2_conv2_residual_kernel,
        out_shape=jax.ShapeDtypeStruct((n, hh, wh, coutp), jnp.float32),
        grid=(n,),
        in_specs=[pl.BlockSpec((1, hh, wh, coutp), lambda b: (b, 0, 0, 0)),
                  pl.BlockSpec((1, 1, hh, wh, cp), lambda b: (b, 0, 0, 0, 0)),
                  pl.BlockSpec((1, coutp), lambda b: (0, 0)),
                  pl.BlockSpec((1, coutp), lambda b: (0, 0)),
                  pl.BlockSpec((9, coutp, coutp), lambda b: (0, 0, 0)),
                  pl.BlockSpec((1, coutp), lambda b: (0, 0)),
                  pl.BlockSpec((cp, coutp), lambda b: (0, 0)),
                  pl.BlockSpec((1, coutp), lambda b: (0, 0))],
        out_specs=pl.BlockSpec((1, hh, wh, coutp), lambda b: (b, 0, 0, 0)),
        scratch_shapes=[pltpu.VMEM((hh + 2, wh + 2, coutp), jnp.float32)],
        compiler_params=pltpu.CompilerParams(dimension_semantics=("parallel",)),
    )(c1, xph, scale2, shift2, w2p, b2, wres, bres)

    out = out[..., :cout]                                  # drop lane padding
    return jnp.transpose(out, (0, 3, 1, 2))                # NHWC -> NCHW


# ------------------------------ pure-JAX reference ------------------------------

def _bn_train_ref(x, gamma, beta):
    mean = jnp.mean(x, axis=(0, 1, 2), keepdims=True)
    var = jnp.mean((x - mean) ** 2, axis=(0, 1, 2), keepdims=True)
    return (x - mean) * jax.lax.rsqrt(var + EPS) * gamma + beta


def reference_forward(x_nchw, params):
    x = jnp.transpose(x_nchw, (0, 2, 3, 1)).astype(jnp.float32)
    cin = x.shape[-1]
    cout = params["w_res"].shape[1]
    dn = ("NHWC", "HWIO", "NHWC")
    hi = jax.lax.Precision.HIGHEST

    res = jax.lax.conv_general_dilated(
        x, params["w_res"].reshape(1, 1, cin, cout), (2, 2), "VALID",
        dimension_numbers=dn, precision=hi) + params["b_res"]
    h1 = jnp.clip(_bn_train_ref(x, params["gamma1"], params["beta1"]), 0.0, 6.0)
    c1 = jax.lax.conv_general_dilated(
        h1, params["w1"], (2, 2), [(1, 1), (1, 1)],
        dimension_numbers=dn, precision=hi) + params["b1"]
    h2 = jnp.clip(_bn_train_ref(c1, params["gamma2"], params["beta2"]), 0.0, 6.0)
    c2 = jax.lax.conv_general_dilated(
        h2, params["w2"], (1, 1), [(1, 1), (1, 1)],
        dimension_numbers=dn, precision=hi) + params["b2"]
    out = c2 + res
    return jnp.transpose(out, (0, 3, 1, 2))


# ------------------------------ main ------------------------------

if __name__ == "__main__":
    N, CIN, COUT, H, W = 2, 4, 8, 16, 16

    key = jax.random.PRNGKey(0)
    ks = jax.random.split(key, 12)

    params = {
        # BatchNorm2d(in_channels) affine params
        "gamma1": jax.random.uniform(ks[0], (1, CIN), jnp.float32, 0.5, 1.5),
        "beta1":  jax.random.normal(ks[1], (1, CIN), jnp.float32) * 0.1,
        # BatchNorm2d(out_channels) affine params
        "gamma2": jax.random.uniform(ks[2], (1, COUT), jnp.float32, 0.5, 1.5),
        "beta2":  jax.random.normal(ks[3], (1, COUT), jnp.float32) * 0.1,
        # conv1: Conv2d(CIN, COUT, k=3, s=2, p=1), HWIO layout
        "w1": jax.random.normal(ks[4], (3, 3, CIN, COUT), jnp.float32) * 0.1,
        "b1": jax.random.normal(ks[5], (1, COUT), jnp.float32) * 0.1,
        # conv2: Conv2d(COUT, COUT, k=3, s=1, p=1), HWIO layout
        "w2": jax.random.normal(ks[6], (3, 3, COUT, COUT), jnp.float32) * 0.1,
        "b2": jax.random.normal(ks[7], (1, COUT), jnp.float32) * 0.1,
        # residual conv: Conv2d(CIN, COUT, k=1, s=2), stored as (CIN, COUT)
        "w_res": jax.random.normal(ks[8], (CIN, COUT), jnp.float32) * 0.1,
        "b_res": jax.random.normal(ks[9], (1, COUT), jnp.float32) * 0.1,
    }

    x = jax.random.normal(ks[10], (N, CIN, H, W), jnp.float32)

    out = downsampling_block_forward(x, params)
    out = jax.block_until_ready(out)

    ref = jax.block_until_ready(reference_forward(x, params))

    assert out.shape == (N, COUT, H // 2, W // 2), out.shape
    np.testing.assert_allclose(np.asarray(out), np.asarray(ref),
                               rtol=2e-2, atol=2e-2)

    print("KERNEL_OK")
</pallas_src>

<mosaic_0001>
module attributes {stable_mosaic.version = 11 : i64} {
  func.func @bn_stats_kernel(%arg0: i32, %arg1: memref<512x128xf32, #tpu.memory_space<vmem>>, %arg2: memref<2x128xf32, #tpu.memory_space<vmem>>) attributes {dimension_semantics = [#tpu.dimension_semantics<arbitrary>], iteration_bounds = array<i64: 1>, scalar_prefetch = 0 : i64, scratch_operands = 0 : i64, tpu.core_type = #tpu.core_type<tc>, window_params = [{transform_indices = @transform_0, window_bounds = array<i64: 512, 128>}, {pipeline_mode = #tpu.pipeline_mode<synchronous>, transform_indices = @transform_1, window_bounds = array<i64: 2, 128>}]} {
    %c0_i32 = arith.constant 0 : i32
    %0 = arith.cmpi eq, %arg0, %c0_i32 : i32
    %1 = arith.extui %0 : i1 to i32
    %c0_i32_0 = arith.constant 0 : i32
    %2 = arith.cmpi ne, %1, %c0_i32_0 : i32
    scf.if %2 {
      %cst_7 = arith.constant 0.000000e+00 : f32
      %13 = vector.broadcast %cst_7 : f32 to vector<2x128xf32>
      %c0_8 = arith.constant 0 : index
      %c0_9 = arith.constant 0 : index
      %14 = vector.load %arg2[%c0_8, %c0_9] : memref<2x128xf32, #tpu.memory_space<vmem>>, vector<2x128xf32>
      tpu.vector_store %arg2[%c0_8, %c0_9], %13 {strides = array<i32>} : memref<2x128xf32, #tpu.memory_space<vmem>>, vector<2x128xf32>,
    } else {
    }
    %c0 = arith.constant 0 : index
    %c0_1 = arith.constant 0 : index
    %3 = vector.load %arg1[%c0, %c0_1] : memref<512x128xf32, #tpu.memory_space<vmem>>, vector<512x128xf32>
    %c0_2 = arith.constant 0 : index
    %c0_3 = arith.constant 0 : index
    %4 = vector.load %arg2[%c0_2, %c0_3] : memref<2x128xf32, #tpu.memory_space<vmem>>, vector<2x128xf32>
    %cst = arith.constant dense<0.000000e+00> : vector<128xf32>
    %5 = vector.multi_reduction <add>, %3, %cst [0] : vector<512x128xf32> to vector<128xf32>
    %6 = vector.shape_cast %5 : vector<128xf32> to vector<1x128xf32>
    %7 = arith.mulf %3, %3 : vector<512x128xf32>
    %cst_4 = arith.constant dense<0.000000e+00> : vector<128xf32>
    %8 = vector.multi_reduction <add>, %7, %cst_4 [0] : vector<512x128xf32> to vector<128xf32>
    %9 = vector.shape_cast %8 : vector<128xf32> to vector<1x128xf32>
    %10 = tpu.concatenate %6, %9 in 0 : vector<1x128xf32>, vector<1x128xf32> -> vector<2x128xf32>
    %11 = arith.addf %4, %10 : vector<2x128xf32>
    %c0_5 = arith.constant 0 : index
    %c0_6 = arith.constant 0 : index
    %12 = vector.load %arg2[%c0_5, %c0_6] : memref<2x128xf32, #tpu.memory_space<vmem>>, vector<2x128xf32>
    tpu.vector_store %arg2[%c0_5, %c0_6], %11 {strides = array<i32>} : memref<2x128xf32, #tpu.memory_space<vmem>>, vector<2x128xf32>,
    return
  }
  func.func @transform_0(%arg0: i32) -> (i32, i32) {
    %c0_i32 = arith.constant 0 : i32
    %c0_i32_0 = arith.constant 0 : i32
    return %arg0, %c0_i32 : i32, i32
  }
  func.func @transform_1(%arg0: i32) -> (i32, i32) {
    %c0_i32 = arith.constant 0 : i32
    %c0_i32_0 = arith.constant 0 : i32
    %c0_i32_1 = arith.constant 0 : i32
    return %c0_i32, %c0_i32_0 : i32, i32
  }
}

</mosaic_0001>

<bundles_post_ra>
// kernel: tpu_custom_call.1
= control target key start
LH: loop header
LB: loop body
LE: loop exit
PB: predicated region body
PF: predicated region fallthrough
CT: control target
= control target key end

     0   :  { %6 = vsyncpa [#allocation3], 0  ;;  %s406_s0 = inlined_call_operand.hbm [shape: f32[512,128], index: 0, kind: input, shape index: {}]   ;;  %s407_s1 = inlined_call_operand.hbm [shape: f32[2,128], index: 1, kind: output, shape index: {}]  }
   0x1   :  { %7 = vsyncpa [#allocation4], 0  ;;  %s367_s6 = smov [#allocation2]   ;;  %s319_s10 = scalar_lea.hbm %s406_s0, 8192 }
   0x2   :  { %s13_s7 = sshll.u32 %s367_s6, 4  ;;  %p320_p0 = scmp.ne.s32.totalorder %s406_s0, %s319_s10  ;;  %s14_s7 = int_to_ptr.vmem [resolvable:$true] %s13_s7 }
   0x3   :  { %p323_p1 = scmp.lt.u32.totalorder %s319_s10, %s406_s0 }
   0x5   :  { %p325_p2 = pnand %p323_p1, %p320_p0 }
   0x7   :  { %328 = shalt.err (!%p325_p2)
}
   0x8   :  { %s329_s15 = scalar_lea.vmem %s14_s7, 8192  ;;  %p334_p4 = scmp.lt.s32.totalorder %s14_s7, %s14_s7 }
   0x9   :  { %p330_p3 = scmp.ne.s32.totalorder %s14_s7, %s329_s15  ;;  %p335_p5 = scmp.lt.s32.totalorder %s329_s15, %s329_s15 }
   0xb   :  { %p336_p6 = por %p335_p5, %p334_p4 }
   0xd   :  { %p337_p7 = pnand %p336_p6, %p330_p3 }
   0xf   :  { %340 = shalt.err (!%p337_p7)
}
  0x10   :  { %s368_s16 = smov 128   ;;  %s369_s17 = smov 8  }
  0x11   :  { %19 = dma.hbm_to_vmem [thread:$0]  %s406_s0, 8192, %s14_s7, [#allocation3], %s368_s16, %s368_s16, %s369_s17  }
  0x12   :  { %363 = dma.done.wait [#allocation3], 8192  }
  0x13   :  { %364 = vsyncadd [#allocation3], 4294959104  ;;  %v370_v0 = vmov 0.0   ;;  %v28_v1 = vld [vmem:[#allocation2] sm:$0xff]  ;;  %v29_v2 = vld [vmem:[#allocation2 + $0x8] sm:$0xff]  ;;  %vm295_vm0 = vcmask 1040384  }
  0x14   :  { %27 = vst [vmem:[#allocation5] sm:$0x3] %v370_v0  ;;  %v30_v3 = vld [vmem:[#allocation2 + $0x10] sm:$0xff]  ;;  %v31_v4 = vld [vmem:[#allocation2 + $0x18] sm:$0xff]  ;;  %v93_v5 = vadd.f32 %v29_v2, %v28_v1  ;;  %v162_v6 = vmul.f32 %v28_v1, %v28_v1  ;;  %v163_v7 = vmul.f32 %v29_v2, %v29_v2  ;;  %v32_v9 = vld [vmem:[#allocation2 + $0x20] sm:$0xff]  ;;  %s371_s0 = smov [#allocation5]  }
  0x15   :  { %v164_v8 = vmul.f32 %v30_v3, %v30_v3  ;;  %v165_v11 = vmul.f32 %v31_v4, %v31_v4  ;;  %v33_v13 = vld [vmem:[#allocation2 + $0x28] sm:$0xff]  ;;  %v166_v15 = vmul.f32 %v32_v9, %v32_v9  ;;  %v34_v17 = vld [vmem:[#allocation2 + $0x30] sm:$0xff]  ;;  %v35_v21 = vld [vmem:[#allocation2 + $0x38] sm:$0xff]  ;;  %s305_s20 = sshll.u32 %s371_s0, 4  ;;  %s306_s20 = int_to_ptr.vmem [resolvable:$true] %s305_s20 }
  0x16   :  { %v94_v10 = vadd.f32 %v93_v5, %v30_v3  ;;  %v226_v12 = vadd.f32 %v163_v7, %v162_v6  ;;  %v167_v19 = vmul.f32 %v33_v13, %v33_v13  ;;  %v168_v23 = vmul.f32 %v34_v17, %v34_v17  ;;  %v36_v25 = vld [vmem:[#allocation2 + $0x40] sm:$0xff]  ;;  %v37_v29 = vld [vmem:[#allocation2 + $0x48] sm:$0xff]  ;;  %v38_v33 = vld [vmem:[#allocation2 + $0x50] sm:$0xff]  ;;  %s341_s21 = scalar_lea.vmem %s306_s20, 32  ;;  %p346_p9 = scmp.lt.s32.totalorder %s306_s20, %s306_s20 }
  0x17   :  { %v169_v27 = vmul.f32 %v35_v21, %v35_v21  ;;  %v170_v31 = vmul.f32 %v36_v25, %v36_v25  ;;  %v171_v35 = vmul.f32 %v37_v29, %v37_v29  ;;  %v39_v37 = vld [vmem:[#allocation2 + $0x58] sm:$0xff]  ;;  %v172_v39 = vmul.f32 %v38_v33, %v38_v33  ;;  %v40_v41 = vld [vmem:[#allocation2 + $0x60] sm:$0xff]  ;;  %v41_v45 = vld [vmem:[#allocation2 + $0x68] sm:$0xff]  ;;  %p342_p8 = scmp.ne.s32.totalorder %s306_s20, %s341_s21  ;;  %p347_p10 = scmp.lt.s32.totalorder %s341_s21, %s341_s21 }
  0x18   :  { %v95_v14 = vadd.f32 %v94_v10, %v31_v4  ;;  %v227_v16 = vadd.f32 %v226_v12, %v164_v8  ;;  %v173_v43 = vmul.f32 %v39_v37, %v39_v37  ;;  %v174_v47 = vmul.f32 %v40_v41, %v40_v41  ;;  %v42_v49 = vld [vmem:[#allocation2 + $0x70] sm:$0xff]  ;;  %v43_v53 = vld [vmem:[#allocation2 + $0x78] sm:$0xff]  ;;  %v44_v57 = vld [vmem:[#allocation2 + $0x80] sm:$0xff] }
  0x19   :  { %v175_v51 = vmul.f32 %v41_v45, %v41_v45  ;;  %v176_v55 = vmul.f32 %v42_v49, %v42_v49  ;;  %v177_v59 = vmul.f32 %v43_v53, %v43_v53  ;;  %v45_v61 = vld [vmem:[#allocation2 + $0x88] sm:$0xff]  ;;  %v178_v63 = vmul.f32 %v44_v57, %v44_v57  ;;  %v46_v1 = vld [vmem:[#allocation2 + $0x90] sm:$0xff]  ;;  %v47_v5 = vld [vmem:[#allocation2 + $0x98] sm:$0xff]  ;;  %p348_p11 = por %p347_p10, %p346_p9 }
  0x1a   :  { %v96_v18 = vadd.f32 %v95_v14, %v32_v9  ;;  %v228_v20 = vadd.f32 %v227_v16, %v165_v11  ;;  %v179_v3 = vmul.f32 %v45_v61, %v45_v61  ;;  %v180_v7 = vmul.f32 %v46_v1, %v46_v1  ;;  %v48_v9 = vld [vmem:[#allocation2 + $0xa0] sm:$0xff] }
  0x1b   :  { %v181_v11 = vmul.f32 %v47_v5, %v47_v5  ;;  %p349_p12 = pnand %p348_p11, %p342_p8 }
  0x1c   :  { %v97_v22 = vadd.f32 %v96_v18, %v33_v13  ;;  %v229_v24 = vadd.f32 %v228_v20, %v166_v15  ;;  %v49_v13 = vld [vmem:[#allocation2 + $0xa8] sm:$0xff]  ;;  %v182_v15 = vmul.f32 %v48_v9, %v48_v9 }
  0x1e   :  { %v98_v26 = vadd.f32 %v97_v22, %v34_v17  ;;  %v230_v28 = vadd.f32 %v229_v24, %v167_v19  ;;  %v50_v17 = vld [vmem:[#allocation2 + $0xb0] sm:$0xff]  ;;  %v183_v19 = vmul.f32 %v49_v13, %v49_v13 }
  0x20   :  { %v99_v30 = vadd.f32 %v98_v26, %v35_v21  ;;  %v231_v32 = vadd.f32 %v230_v28, %v168_v23  ;;  %v51_v21 = vld [vmem:[#allocation2 + $0xb8] sm:$0xff]  ;;  %v184_v23 = vmul.f32 %v50_v17, %v50_v17 }
  0x22   :  { %v100_v34 = vadd.f32 %v99_v30, %v36_v25  ;;  %v232_v36 = vadd.f32 %v231_v32, %v169_v27  ;;  %v52_v25 = vld [vmem:[#allocation2 + $0xc0] sm:$0xff]  ;;  %v185_v27 = vmul.f32 %v51_v21, %v51_v21 }
  0x24   :  { %v101_v38 = vadd.f32 %v100_v34, %v37_v29  ;;  %v233_v40 = vadd.f32 %v232_v36, %v170_v31  ;;  %v53_v29 = vld [vmem:[#allocation2 + $0xc8] sm:$0xff]  ;;  %v186_v31 = vmul.f32 %v52_v25, %v52_v25 }
  0x26   :  { %v102_v42 = vadd.f32 %v101_v38, %v38_v33  ;;  %v234_v44 = vadd.f32 %v233_v40, %v171_v35  ;;  %v54_v33 = vld [vmem:[#allocation2 + $0xd0] sm:$0xff]  ;;  %v187_v35 = vmul.f32 %v53_v29, %v53_v29 }
  0x28   :  { %v103_v46 = vadd.f32 %v102_v42, %v39_v37  ;;  %v235_v48 = vadd.f32 %v234_v44, %v172_v39  ;;  %v55_v37 = vld [vmem:[#allocation2 + $0xd8] sm:$0xff]  ;;  %v188_v39 = vmul.f32 %v54_v33, %v54_v33 }
  0x2a   :  { %v104_v50 = vadd.f32 %v103_v46, %v40_v41  ;;  %v236_v52 = vadd.f32 %v235_v48, %v173_v43  ;;  %v56_v41 = vld [vmem:[#allocation2 + $0xe0] sm:$0xff]  ;;  %v189_v43 = vmul.f32 %v55_v37, %v55_v37 }
  0x2c   :  { %v105_v54 = vadd.f32 %v104_v50, %v41_v45  ;;  %v237_v56 = vadd.f32 %v236_v52, %v174_v47  ;;  %v57_v45 = vld [vmem:[#allocation2 + $0xe8] sm:$0xff]  ;;  %v190_v47 = vmul.f32 %v56_v41, %v56_v41 }
  0x2e   :  { %v106_v58 = vadd.f32 %v105_v54, %v42_v49  ;;  %v238_v60 = vadd.f32 %v237_v56, %v175_v51  ;;  %v58_v49 = vld [vmem:[#allocation2 + $0xf0] sm:$0xff]  ;;  %v191_v51 = vmul.f32 %v57_v45, %v57_v45 }
  0x30   :  { %v107_v62 = vadd.f32 %v106_v58, %v43_v53  ;;  %v239_v0 = vadd.f32 %v238_v60, %v176_v55  ;;  %v59_v53 = vld [vmem:[#allocation2 + $0xf8] sm:$0xff]  ;;  %v192_v55 = vmul.f32 %v58_v49, %v58_v49 }
  0x32   :  { %v108_v2 = vadd.f32 %v107_v62, %v44_v57  ;;  %v240_v4 = vadd.f32 %v239_v0, %v177_v59  ;;  %v60_v57 = vld [vmem:[#allocation2 + $0x100] sm:$0xff]  ;;  %v193_v59 = vmul.f32 %v59_v53, %v59_v53 }
  0x34   :  { %v109_v6 = vadd.f32 %v108_v2, %v45_v61  ;;  %v241_v8 = vadd.f32 %v240_v4, %v178_v63  ;;  %v61_v61 = vld [vmem:[#allocation2 + $0x108] sm:$0xff]  ;;  %v194_v63 = vmul.f32 %v60_v57, %v60_v57 }
  0x36   :  { %v110_v10 = vadd.f32 %v109_v6, %v46_v1  ;;  %v242_v12 = vadd.f32 %v241_v8, %v179_v3  ;;  %v62_v1 = vld [vmem:[#allocation2 + $0x110] sm:$0xff]  ;;  %v195_v3 = vmul.f32 %v61_v61, %v61_v61 }
  0x38   :  { %v111_v14 = vadd.f32 %v110_v10, %v47_v5  ;;  %v243_v16 = vadd.f32 %v242_v12, %v180_v7  ;;  %v63_v5 = vld [vmem:[#allocation2 + $0x118] sm:$0xff]  ;;  %v196_v7 = vmul.f32 %v62_v1, %v62_v1 }
  0x3a   :  { %v112_v18 = vadd.f32 %v111_v14, %v48_v9  ;;  %v244_v20 = vadd.f32 %v243_v16, %v181_v11  ;;  %v64_v9 = vld [vmem:[#allocation2 + $0x120] sm:$0xff]  ;;  %v197_v11 = vmul.f32 %v63_v5, %v63_v5 }
  0x3c   :  { %v113_v22 = vadd.f32 %v112_v18, %v49_v13  ;;  %v245_v24 = vadd.f32 %v244_v20, %v182_v15  ;;  %v65_v13 = vld [vmem:[#allocation2 + $0x128] sm:$0xff]  ;;  %v198_v15 = vmul.f32 %v64_v9, %v64_v9 }
  0x3e   :  { %v114_v26 = vadd.f32 %v113_v22, %v50_v17  ;;  %v246_v28 = vadd.f32 %v245_v24, %v183_v19  ;;  %v66_v17 = vld [vmem:[#allocation2 + $0x130] sm:$0xff]  ;;  %v199_v19 = vmul.f32 %v65_v13, %v65_v13 }
  0x40   :  { %v115_v30 = vadd.f32 %v114_v26, %v51_v21  ;;  %v247_v32 = vadd.f32 %v246_v28, %v184_v23  ;;  %v67_v21 = vld [vmem:[#allocation2 + $0x138] sm:$0xff]  ;;  %v200_v23 = vmul.f32 %v66_v17, %v66_v17 }
  0x42   :  { %v116_v34 = vadd.f32 %v115_v30, %v52_v25  ;;  %v248_v36 = vadd.f32 %v247_v32, %v185_v27  ;;  %v68_v25 = vld [vmem:[#allocation2 + $0x140] sm:$0xff]  ;;  %v201_v27 = vmul.f32 %v67_v21, %v67_v21 }
  0x44   :  { %v117_v38 = vadd.f32 %v116_v34, %v53_v29  ;;  %v249_v40 = vadd.f32 %v248_v36, %v186_v31  ;;  %v69_v29 = vld [vmem:[#allocation2 + $0x148] sm:$0xff]  ;;  %v202_v31 = vmul.f32 %v68_v25, %v68_v25 }
  0x46   :  { %v118_v42 = vadd.f32 %v117_v38, %v54_v33  ;;  %v250_v44 = vadd.f32 %v249_v40, %v187_v35  ;;  %v70_v33 = vld [vmem:[#allocation2 + $0x150] sm:$0xff]  ;;  %v203_v35 = vmul.f32 %v69_v29, %v69_v29 }
  0x48   :  { %v119_v46 = vadd.f32 %v118_v42, %v55_v37  ;;  %v251_v48 = vadd.f32 %v250_v44, %v188_v39  ;;  %v71_v37 = vld [vmem:[#allocation2 + $0x158] sm:$0xff]  ;;  %v204_v39 = vmul.f32 %v70_v33, %v70_v33 }
  0x4a   :  { %v120_v50 = vadd.f32 %v119_v46, %v56_v41  ;;  %v252_v52 = vadd.f32 %v251_v48, %v189_v43  ;;  %v72_v41 = vld [vmem:[#allocation2 + $0x160] sm:$0xff]  ;;  %v205_v43 = vmul.f32 %v71_v37, %v71_v37 }
  0x4c   :  { %v121_v54 = vadd.f32 %v120_v50, %v57_v45  ;;  %v253_v56 = vadd.f32 %v252_v52, %v190_v47  ;;  %v73_v45 = vld [vmem:[#allocation2 + $0x168] sm:$0xff]  ;;  %v206_v47 = vmul.f32 %v72_v41, %v72_v41 }
  0x4e   :  { %v122_v58 = vadd.f32 %v121_v54, %v58_v49  ;;  %v254_v60 = vadd.f32 %v253_v56, %v191_v51  ;;  %v74_v49 = vld [vmem:[#allocation2 + $0x170] sm:$0xff]  ;;  %v207_v51 = vmul.f32 %v73_v45, %v73_v45 }
  0x50   :  { %v123_v62 = vadd.f32 %v122_v58, %v59_v53  ;;  %v255_v0 = vadd.f32 %v254_v60, %v192_v55  ;;  %v75_v53 = vld [vmem:[#allocation2 + $0x178] sm:$0xff]  ;;  %v208_v55 = vmul.f32 %v74_v49, %v74_v49 }
  0x52   :  { %v124_v2 = vadd.f32 %v123_v62, %v60_v57  ;;  %v256_v4 = vadd.f32 %v255_v0, %v193_v59  ;;  %v76_v57 = vld [vmem:[#allocation2 + $0x180] sm:$0xff]  ;;  %v209_v59 = vmul.f32 %v75_v53, %v75_v53 }
  0x54   :  { %v125_v6 = vadd.f32 %v124_v2, %v61_v61  ;;  %v257_v8 = vadd.f32 %v256_v4, %v194_v63  ;;  %v77_v61 = vld [vmem:[#allocation2 + $0x188] sm:$0xff]  ;;  %v210_v63 = vmul.f32 %v76_v57, %v76_v57 }
  0x56   :  { %v126_v10 = vadd.f32 %v125_v6, %v62_v1  ;;  %v258_v12 = vadd.f32 %v257_v8, %v195_v3  ;;  %v78_v1 = vld [vmem:[#allocation2 + $0x190] sm:$0xff]  ;;  %v211_v3 = vmul.f32 %v77_v61, %v77_v61 }
  0x58   :  { %v127_v14 = vadd.f32 %v126_v10, %v63_v5  ;;  %v259_v16 = vadd.f32 %v258_v12, %v196_v7  ;;  %v79_v5 = vld [vmem:[#allocation2 + $0x198] sm:$0xff]  ;;  %v212_v7 = vmul.f32 %v78_v1, %v78_v1 }
  0x5a   :  { %v128_v18 = vadd.f32 %v127_v14, %v64_v9  ;;  %v260_v20 = vadd.f32 %v259_v16, %v197_v11  ;;  %v80_v9 = vld [vmem:[#allocation2 + $0x1a0] sm:$0xff]  ;;  %v213_v11 = vmul.f32 %v79_v5, %v79_v5 }
  0x5c   :  { %v129_v22 = vadd.f32 %v128_v18, %v65_v13  ;;  %v261_v24 = vadd.f32 %v260_v20, %v198_v15  ;;  %v81_v13 = vld [vmem:[#allocation2 + $0x1a8] sm:$0xff]  ;;  %v214_v15 = vmul.f32 %v80_v9, %v80_v9 }
  0x5e   :  { %v130_v26 = vadd.f32 %v129_v22, %v66_v17  ;;  %v262_v28 = vadd.f32 %v261_v24, %v199_v19  ;;  %v82_v17 = vld [vmem:[#allocation2 + $0x1b0] sm:$0xff]  ;;  %v215_v19 = vmul.f32 %v81_v13, %v81_v13 }
  0x60   :  { %v131_v30 = vadd.f32 %v130_v26, %v67_v21  ;;  %v263_v32 = vadd.f32 %v262_v28, %v200_v23  ;;  %v83_v21 = vld [vmem:[#allocation2 + $0x1b8] sm:$0xff]  ;;  %v216_v23 = vmul.f32 %v82_v17, %v82_v17 }
  0x62   :  { %v132_v34 = vadd.f32 %v131_v30, %v68_v25  ;;  %v264_v36 = vadd.f32 %v263_v32, %v201_v27  ;;  %v84_v25 = vld [vmem:[#allocation2 + $0x1c0] sm:$0xff]  ;;  %v217_v27 = vmul.f32 %v83_v21, %v83_v21 }
  0x64   :  { %v133_v38 = vadd.f32 %v132_v34, %v69_v29  ;;  %v265_v40 = vadd.f32 %v264_v36, %v202_v31  ;;  %v85_v29 = vld [vmem:[#allocation2 + $0x1c8] sm:$0xff]  ;;  %v218_v31 = vmul.f32 %v84_v25, %v84_v25 }
  0x66   :  { %v134_v42 = vadd.f32 %v133_v38, %v70_v33  ;;  %v266_v44 = vadd.f32 %v265_v40, %v203_v35  ;;  %v86_v33 = vld [vmem:[#allocation2 + $0x1d0] sm:$0xff]  ;;  %v219_v35 = vmul.f32 %v85_v29, %v85_v29 }
  0x68   :  { %v135_v46 = vadd.f32 %v134_v42, %v71_v37  ;;  %v267_v48 = vadd.f32 %v266_v44, %v204_v39  ;;  %v87_v37 = vld [vmem:[#allocation2 + $0x1d8] sm:$0xff]  ;;  %v220_v39 = vmul.f32 %v86_v33, %v86_v33 }
  0x6a   :  { %v136_v50 = vadd.f32 %v135_v46, %v72_v41  ;;  %v268_v52 = vadd.f32 %v267_v48, %v205_v43  ;;  %v88_v41 = vld [vmem:[#allocation2 + $0x1e0] sm:$0xff]  ;;  %v221_v43 = vmul.f32 %v87_v37, %v87_v37 }
  0x6c   :  { %v137_v54 = vadd.f32 %v136_v50, %v73_v45  ;;  %v269_v56 = vadd.f32 %v268_v52, %v206_v47  ;;  %v89_v45 = vld [vmem:[#allocation2 + $0x1e8] sm:$0xff]  ;;  %v222_v47 = vmul.f32 %v88_v41, %v88_v41 }
  0x6e   :  { %v138_v58 = vadd.f32 %v137_v54, %v74_v49  ;;  %v270_v60 = vadd.f32 %v269_v56, %v207_v51  ;;  %v90_v49 = vld [vmem:[#allocation2 + $0x1f0] sm:$0xff]  ;;  %v223_v51 = vmul.f32 %v89_v45, %v89_v45 }
  0x70   :  { %v139_v62 = vadd.f32 %v138_v58, %v75_v53  ;;  %v271_v0 = vadd.f32 %v270_v60, %v208_v55  ;;  %v91_v53 = vld [vmem:[#allocation2 + $0x1f8] sm:$0xff]  ;;  %v224_v55 = vmul.f32 %v90_v49, %v90_v49 }
  0x71   :  { %v225_v58 = vmul.f32 %v91_v53, %v91_v53 }
  0x72   :  { %v140_v2 = vadd.f32 %v139_v62, %v76_v57  ;;  %v272_v4 = vadd.f32 %v271_v0, %v209_v59 }
  0x74   :  { %v141_v6 = vadd.f32 %v140_v2, %v77_v61  ;;  %v273_v8 = vadd.f32 %v272_v4, %v210_v63 }
  0x76   :  { %v142_v10 = vadd.f32 %v141_v6, %v78_v1  ;;  %v274_v12 = vadd.f32 %v273_v8, %v211_v3 }
  0x78   :  { %v143_v14 = vadd.f32 %v142_v10, %v79_v5  ;;  %v275_v16 = vadd.f32 %v274_v12, %v212_v7  ;;  %v92_v10 = vld [vmem:[#allocation5] sm:$0x3] }
  0x7a   :  { %v144_v18 = vadd.f32 %v143_v14, %v80_v9  ;;  %v276_v20 = vadd.f32 %v275_v16, %v213_v11 }
  0x7c   :  { %v145_v22 = vadd.f32 %v144_v18, %v81_v13  ;;  %v277_v24 = vadd.f32 %v276_v20, %v214_v15 }
  0x7e   :  { %v146_v26 = vadd.f32 %v145_v22, %v82_v17  ;;  %v278_v28 = vadd.f32 %v277_v24, %v215_v19 }
  0x80   :  { %v147_v30 = vadd.f32 %v146_v26, %v83_v21  ;;  %v279_v32 = vadd.f32 %v278_v28, %v216_v23 }
  0x82   :  { %v148_v34 = vadd.f32 %v147_v30, %v84_v25  ;;  %v280_v36 = vadd.f32 %v279_v32, %v217_v27 }
  0x84   :  { %v149_v38 = vadd.f32 %v148_v34, %v85_v29  ;;  %v281_v40 = vadd.f32 %v280_v36, %v218_v31 }
  0x86   :  { %v150_v42 = vadd.f32 %v149_v38, %v86_v33  ;;  %v282_v44 = vadd.f32 %v281_v40, %v219_v35 }
  0x88   :  { %v151_v46 = vadd.f32 %v150_v42, %v87_v37  ;;  %v283_v48 = vadd.f32 %v282_v44, %v220_v39 }
  0x8a   :  { %v152_v50 = vadd.f32 %v151_v46, %v88_v41  ;;  %v284_v52 = vadd.f32 %v283_v48, %v221_v43 }
  0x8c   :  { %v153_v54 = vadd.f32 %v152_v50, %v89_v45  ;;  %v285_v56 = vadd.f32 %v284_v52, %v222_v47 }
  0x8e   :  { %v154_v57 = vadd.f32 %v153_v54, %v90_v49  ;;  %v286_v59 = vadd.f32 %v285_v56, %v223_v51 }
  0x90   :  { %v155_v60 = vadd.f32 %v154_v57, %v91_v53  ;;  %v287_v61 = vadd.f32 %v286_v59, %v224_v55 }
  0x92   :  { %v156_v62 = vrot.slane %v155_v60, 4  ;;  %v288_v63 = vadd.f32 %v287_v61, %v225_v58 }
  0x94   :  { %v157_v0 = vadd.f32 %v156_v62, %v155_v60  ;;  %v289_v1 = vrot.slane %v288_v63, 4 }
  0x96   :  { %v158_v2 = vrot.slane %v157_v0, 2  ;;  %v290_v3 = vadd.f32 %v289_v1, %v288_v63 }
  0x98   :  { %v159_v4 = vadd.f32 %v158_v2, %v157_v0  ;;  %v291_v5 = vrot.slane %v290_v3, 2 }
  0x9a   :  { %v160_v6 = vrot.slane %v159_v4, 1  ;;  %v292_v7 = vadd.f32 %v291_v5, %v290_v3 }
  0x9c   :  { %v161_v8 = vadd.f32 %v160_v6, %v159_v4  ;;  %v293_v9 = vrot.slane %v292_v7, 1 }
  0x9e   :  { %v294_v11 = vadd.f32 %v293_v9, %v292_v7 }
  0xa0   :  { %v296_v12 = vsel %vm295_vm0, %v161_v8, %v294_v11 }
  0xa1   :  { %v297_v13 = vadd.f32 %v296_v12, %v92_v10 }
  0xa3   :  { %298 = vst [vmem:[#allocation5] sm:$0x3] %v297_v13 }
  0xa4   :  { %352 = shalt.err (!%p349_p12)
}
  0xa5   :  { %s353_s24 = scalar_lea.hbm %s407_s1, 32 }
  0xa6   :  { %p354_p13 = scmp.ne.s32.totalorder %s407_s1, %s353_s24  ;;  %p357_p0 = scmp.lt.u32.totalorder %s353_s24, %s407_s1 }
  0xa8   :  { %p359_p1 = pnand %p357_p0, %p354_p13 }
  0xaa   :  { %362 = shalt.err (!%p359_p1)
}
  0xab   :  { %308 = dma.vmem_to_hbm [thread:$0]  %s306_s20, 32, %s407_s1, [#allocation4]  }
  0xac   :  { %365 = dma.done.wait [#allocation4], 32  }
  0xad   :  { %366 = vsyncadd [#allocation4], 4294967264 }
  0xae   :  { %312 = vsyncpa [#allocation3], 1 }
  0xaf   :  { %313 = vsyncpa [#allocation4], 1 }

</bundles_post_ra>
